<compile_context>
chip_gen: v5e
topology: v5e:2x2
jax: 0.10.0
libtpu: 0.0.40
codegen_flags: <defaults>
</compile_context>

<pallas_src>
import jax
import jax.numpy as jnp
from jax.experimental import pallas as pl
from jax.experimental.pallas import tpu as pltpu


# ----------------------------------------------------------------------------
# Kernel: one batch tile of the stacked twin-critic MLP.
# ----------------------------------------------------------------------------
def critic_kernel(state_ref, action_ref,
                  w1s_ref, w1a_ref, b1_ref,
                  w2_ref, b2_ref,
                  w3_ref, b3_ref,
                  q_ref):
    # Layer 1: (B, F) @ (F, 256) + (B, A) @ (A, 256)  == concat(state, action) @ W1
    h1 = (jnp.dot(state_ref[...], w1s_ref[...], preferred_element_type=jnp.float32)
          + jnp.dot(action_ref[...], w1a_ref[...], preferred_element_type=jnp.float32)
          + b1_ref[...])
    h1 = jnp.maximum(h1, 0.0)                                        # ReLU

    # Layer 2: (B, 256) @ block_diag(128|128 -> 64|64) -> (B, 128)
    h2 = jnp.dot(h1, w2_ref[...], preferred_element_type=jnp.float32) + b2_ref[...]
    h2 = jnp.maximum(h2, 0.0)                                        # ReLU

    # Head: (B, 128) @ block_diag -> (B, 2)   [col 0 = q1, col 1 = q2]
    q_ref[...] = (jnp.dot(h2, w3_ref[...], preferred_element_type=jnp.float32)
                  + b3_ref[...])


# ----------------------------------------------------------------------------
# Parameter construction & packing.
# ----------------------------------------------------------------------------
def make_params(key, feature_dim, action_dim):
    """PyTorch nn.Linear style uniform init (U[-1/sqrt(fan_in), +])."""
    in_dim = feature_dim + action_dim
    dims = [(in_dim, 128), (128, 64), (64, 1)]
    params = []
    for _net in range(2):
        net_params = []
        for (fi, fo) in dims:
            key, kw, kb = jax.random.split(key, 3)
            bound = 1.0 / jnp.sqrt(jnp.float32(fi))
            w = jax.random.uniform(kw, (fi, fo), jnp.float32, -bound, bound)
            b = jax.random.uniform(kb, (1, fo), jnp.float32, -bound, bound)
            net_params += [w, b]
        params.append(net_params)
    return params  # [[w1,b1,w2,b2,w3,b3] for net1, same for net2]


def pack_params(params, feature_dim):
    """Pack the two per-network parameter lists into stacked/block-diag slabs.

    Done once outside the forward hot path.
    """
    (w1_1, b1_1, w2_1, b2_1, w3_1, b3_1) = params[0]
    (w1_2, b1_2, w2_2, b2_2, w3_2, b3_2) = params[1]

    # Layer 1: side-by-side stack -> (F+A, 256); split rows so the kernel can
    # consume state / action directly without a wrapper-side concat.
    w1 = jnp.concatenate([w1_1, w1_2], axis=1)                   # (F+A, 256)
    w1_state = w1[:feature_dim, :]                               # (F, 256)
    w1_action = w1[feature_dim:, :]                              # (A, 256)
    b1 = jnp.concatenate([b1_1, b1_2], axis=1)                   # (1, 256)

    # Layer 2: block diagonal -> (256, 128)
    w2 = jnp.zeros((256, 128), jnp.float32)
    w2 = w2.at[:128, :64].set(w2_1).at[128:, 64:].set(w2_2)
    b2 = jnp.concatenate([b2_1, b2_2], axis=1)                   # (1, 128)

    # Head: block diagonal -> (128, 2)
    w3 = jnp.zeros((128, 2), jnp.float32)
    w3 = w3.at[:64, 0:1].set(w3_1).at[64:, 1:2].set(w3_2)
    b3 = jnp.concatenate([b3_1, b3_2], axis=1)                   # (1, 2)

    return (w1_state, w1_action, b1, w2, b2, w3, b3)


# ----------------------------------------------------------------------------
# Wrapper.
# ----------------------------------------------------------------------------
def _round_up(x, m):
    return ((x + m - 1) // m) * m


def critic_forward(state, action, packed, *, block_b=512):
    state = state.astype(jnp.float32)
    action = action.astype(jnp.float32)
    B, F = state.shape
    A = action.shape[1]

    if B <= block_b:
        # Single full-extent batch block: allowed regardless of (8,128)
        # divisibility because the block equals the full array dim. No pad copy.
        blk = B
        B_pad = B
    else:
        # Tile the batch with sublane-aligned blocks; pad to a whole number of
        # blocks so every grid step sees a full tile.
        blk = block_b  # multiple of 8
        B_pad = _round_up(B, blk)
        pad = B_pad - B
        if pad:
            state = jnp.pad(state, ((0, pad), (0, 0)))
            action = jnp.pad(action, ((0, pad), (0, 0)))
    grid = (B_pad // blk,)

    w1s, w1a, b1, w2, b2, w3, b3 = packed

    def resident(arr):
        # Full-array block, same tile for every grid step -> stays in VMEM.
        return pl.BlockSpec(arr.shape, lambda i: (0, 0))

    q = pl.pallas_call(
        critic_kernel,
        out_shape=jax.ShapeDtypeStruct((B_pad, 2), jnp.float32),
        grid_spec=pltpu.PrefetchScalarGridSpec(
            num_scalar_prefetch=0,
            grid=grid,
            in_specs=[
                pl.BlockSpec((blk, F), lambda i: (i, 0)),    # state tile
                pl.BlockSpec((blk, A), lambda i: (i, 0)),    # action tile
                resident(w1s), resident(w1a), resident(b1),
                resident(w2), resident(b2),
                resident(w3), resident(b3),
            ],
            out_specs=pl.BlockSpec((blk, 2), lambda i: (i, 0)),
        ),
        compiler_params=pltpu.CompilerParams(
            dimension_semantics=("parallel",)),
    )(state, action, w1s, w1a, b1, w2, b2, w3, b3)

    q1 = q[:B, 0:1]
    q2 = q[:B, 1:2]
    return q1, q2


# ----------------------------------------------------------------------------
# Pure-JAX reference on the ORIGINAL (unpacked) parameters.
# ----------------------------------------------------------------------------
def critic_forward_ref(state, action, params):
    x = jnp.concatenate([state, action], axis=1).astype(jnp.float32)

    def mlp(p):
        w1, b1, w2, b2, w3, b3 = p
        h1 = jnp.maximum(x @ w1 + b1, 0.0)
        h2 = jnp.maximum(h1 @ w2 + b2, 0.0)
        return h2 @ w3 + b3

    return mlp(params[0]), mlp(params[1])


if __name__ == "__main__":
    key = jax.random.PRNGKey(0)
    feature_dim, action_dim, batch = 12, 4, 2

    k_state, k_action, k_params = jax.random.split(key, 3)
    state = jax.random.normal(k_state, (batch, feature_dim), jnp.float32)
    action = jax.random.normal(k_action, (batch, action_dim), jnp.float32)
    params = make_params(k_params, feature_dim, action_dim)
    packed = pack_params(params, feature_dim)

    q1, q2 = critic_forward(state, action, packed)
    q1 = jax.block_until_ready(q1)
    q2 = jax.block_until_ready(q2)

    q1_ref, q2_ref = critic_forward_ref(state, action, params)
    assert q1.shape == (batch, 1) and q2.shape == (batch, 1)
    assert jnp.allclose(q1, q1_ref, atol=1e-5, rtol=1e-5)
    assert jnp.allclose(q2, q2_ref, atol=1e-5, rtol=1e-5)

    print("KERNEL_OK")
</pallas_src>

<mosaic_0001>
module attributes {stable_mosaic.version = 11 : i64} {
  func.func @critic_kernel(%arg0: i32, %arg1: memref<2x12xf32, #tpu.memory_space<vmem>>, %arg2: memref<2x4xf32, #tpu.memory_space<vmem>>, %arg3: memref<12x256xf32, #tpu.memory_space<vmem>>, %arg4: memref<4x256xf32, #tpu.memory_space<vmem>>, %arg5: memref<1x256xf32, #tpu.memory_space<vmem>>, %arg6: memref<256x128xf32, #tpu.memory_space<vmem>>, %arg7: memref<1x128xf32, #tpu.memory_space<vmem>>, %arg8: memref<128x2xf32, #tpu.memory_space<vmem>>, %arg9: memref<1x2xf32, #tpu.memory_space<vmem>>, %arg10: memref<2x2xf32, #tpu.memory_space<vmem>>) attributes {dimension_semantics = [#tpu.dimension_semantics<parallel>], iteration_bounds = array<i64: 1>, scalar_prefetch = 0 : i64, scratch_operands = 0 : i64, tpu.core_type = #tpu.core_type<tc>, window_params = [{transform_indices = @transform_0, window_bounds = array<i64: 2, 12>}, {transform_indices = @transform_1, window_bounds = array<i64: 2, 4>}, {pipeline_mode = #tpu.pipeline_mode<synchronous>, transform_indices = @transform_2, window_bounds = array<i64: 12, 256>}, {pipeline_mode = #tpu.pipeline_mode<synchronous>, transform_indices = @transform_3, window_bounds = array<i64: 4, 256>}, {pipeline_mode = #tpu.pipeline_mode<synchronous>, transform_indices = @transform_4, window_bounds = array<i64: 1, 256>}, {pipeline_mode = #tpu.pipeline_mode<synchronous>, transform_indices = @transform_5, window_bounds = array<i64: 256, 128>}, {pipeline_mode = #tpu.pipeline_mode<synchronous>, transform_indices = @transform_6, window_bounds = array<i64: 1, 128>}, {pipeline_mode = #tpu.pipeline_mode<synchronous>, transform_indices = @transform_7, window_bounds = array<i64: 128, 2>}, {pipeline_mode = #tpu.pipeline_mode<synchronous>, transform_indices = @transform_8, window_bounds = array<i64: 1, 2>}, {transform_indices = @transform_9, window_bounds = array<i64: 2, 2>}]} {
    %c0 = arith.constant 0 : index
    %c0_0 = arith.constant 0 : index
    %0 = vector.load %arg1[%c0, %c0_0] : memref<2x12xf32, #tpu.memory_space<vmem>>, vector<2x12xf32>
    %c0_1 = arith.constant 0 : index
    %c0_2 = arith.constant 0 : index
    %1 = vector.load %arg3[%c0_1, %c0_2] : memref<12x256xf32, #tpu.memory_space<vmem>>, vector<12x256xf32>
    %cst = arith.constant dense<0.000000e+00> : vector<2x256xf32>
    %2 = tpu.matmul %0, %1, %cst {dimension_numbers = #tpu.dot_dimension_numbers<[1], [0], [0], [1], [0, 0, 1, 1], [], []>} : vector<2x12xf32>, vector<12x256xf32>, vector<2x256xf32> -> vector<2x256xf32>
    %c0_3 = arith.constant 0 : index
    %c0_4 = arith.constant 0 : index
    %3 = vector.load %arg2[%c0_3, %c0_4] : memref<2x4xf32, #tpu.memory_space<vmem>>, vector<2x4xf32>
    %c0_5 = arith.constant 0 : index
    %c0_6 = arith.constant 0 : index
    %4 = vector.load %arg4[%c0_5, %c0_6] : memref<4x256xf32, #tpu.memory_space<vmem>>, vector<4x256xf32>
    %cst_7 = arith.constant dense<0.000000e+00> : vector<2x256xf32>
    %5 = tpu.matmul %3, %4, %cst_7 {dimension_numbers = #tpu.dot_dimension_numbers<[1], [0], [0], [1], [0, 0, 1, 1], [], []>} : vector<2x4xf32>, vector<4x256xf32>, vector<2x256xf32> -> vector<2x256xf32>
    %6 = arith.addf %2, %5 : vector<2x256xf32>
    %c0_8 = arith.constant 0 : index
    %c0_9 = arith.constant 0 : index
    %7 = vector.load %arg5[%c0_8, %c0_9] : memref<1x256xf32, #tpu.memory_space<vmem>>, vector<1x256xf32>
    %8 = vector.broadcast %7 : vector<1x256xf32> to vector<2x256xf32>
    %9 = arith.addf %6, %8 : vector<2x256xf32>
    %cst_10 = arith.constant 0.000000e+00 : f32
    %10 = vector.broadcast %cst_10 : f32 to vector<2x256xf32>
    %11 = arith.maximumf %9, %10 : vector<2x256xf32>
    %c0_11 = arith.constant 0 : index
    %c0_12 = arith.constant 0 : index
    %12 = vector.load %arg6[%c0_11, %c0_12] : memref<256x128xf32, #tpu.memory_space<vmem>>, vector<256x128xf32>
    %cst_13 = arith.constant dense<0.000000e+00> : vector<2x128xf32>
    %13 = tpu.matmul %11, %12, %cst_13 {dimension_numbers = #tpu.dot_dimension_numbers<[1], [0], [0], [1], [0, 0, 1, 1], [], []>} : vector<2x256xf32>, vector<256x128xf32>, vector<2x128xf32> -> vector<2x128xf32>
    %c0_14 = arith.constant 0 : index
    %c0_15 = arith.constant 0 : index
    %14 = vector.load %arg7[%c0_14, %c0_15] : memref<1x128xf32, #tpu.memory_space<vmem>>, vector<1x128xf32>
    %15 = vector.broadcast %14 : vector<1x128xf32> to vector<2x128xf32>
    %16 = arith.addf %13, %15 : vector<2x128xf32>
    %cst_16 = arith.constant 0.000000e+00 : f32
    %17 = vector.broadcast %cst_16 : f32 to vector<2x128xf32>
    %18 = arith.maximumf %16, %17 : vector<2x128xf32>
    %c0_17 = arith.constant 0 : index
    %c0_18 = arith.constant 0 : index
    %19 = vector.load %arg8[%c0_17, %c0_18] : memref<128x2xf32, #tpu.memory_space<vmem>>, vector<128x2xf32>
    %cst_19 = arith.constant dense<0.000000e+00> : vector<2x2xf32>
    %20 = tpu.matmul %18, %19, %cst_19 {dimension_numbers = #tpu.dot_dimension_numbers<[1], [0], [0], [1], [0, 0, 1, 1], [], []>} : vector<2x128xf32>, vector<128x2xf32>, vector<2x2xf32> -> vector<2x2xf32>
    %c0_20 = arith.constant 0 : index
    %c0_21 = arith.constant 0 : index
    %21 = vector.load %arg9[%c0_20, %c0_21] : memref<1x2xf32, #tpu.memory_space<vmem>>, vector<1x2xf32>
    %22 = vector.broadcast %21 : vector<1x2xf32> to vector<2x2xf32>
    %23 = arith.addf %20, %22 : vector<2x2xf32>
    %c0_22 = arith.constant 0 : index
    %c0_23 = arith.constant 0 : index
    %24 = vector.load %arg10[%c0_22, %c0_23] : memref<2x2xf32, #tpu.memory_space<vmem>>, vector<2x2xf32>
    tpu.vector_store %arg10[%c0_22, %c0_23], %23 {strides = array<i32>} : memref<2x2xf32, #tpu.memory_space<vmem>>, vector<2x2xf32>,
    return
  }
  func.func @transform_0(%arg0: i32) -> (i32, i32) {
    %c0_i32 = arith.constant 0 : i32
    %c0_i32_0 = arith.constant 0 : i32
    return %arg0, %c0_i32 : i32, i32
  }
  func.func @transform_1(%arg0: i32) -> (i32, i32) {
    %c0_i32 = arith.constant 0 : i32
    %c0_i32_0 = arith.constant 0 : i32
    return %arg0, %c0_i32 : i32, i32
  }
  func.func @transform_2(%arg0: i32) -> (i32, i32) {
    %c0_i32 = arith.constant 0 : i32
    %c0_i32_0 = arith.constant 0 : i32
    %c0_i32_1 = arith.constant 0 : i32
    return %c0_i32, %c0_i32_0 : i32, i32
  }
  func.func @transform_3(%arg0: i32) -> (i32, i32) {
    %c0_i32 = arith.constant 0 : i32
    %c0_i32_0 = arith.constant 0 : i32
    %c0_i32_1 = arith.constant 0 : i32
    return %c0_i32, %c0_i32_0 : i32, i32
  }
  func.func @transform_4(%arg0: i32) -> (i32, i32) {
    %c0_i32 = arith.constant 0 : i32
    %c0_i32_0 = arith.constant 0 : i32
    %c0_i32_1 = arith.constant 0 : i32
    return %c0_i32, %c0_i32_0 : i32, i32
  }
  func.func @transform_5(%arg0: i32) -> (i32, i32) {
    %c0_i32 = arith.constant 0 : i32
    %c0_i32_0 = arith.constant 0 : i32
    %c0_i32_1 = arith.constant 0 : i32
    return %c0_i32, %c0_i32_0 : i32, i32
  }
  func.func @transform_6(%arg0: i32) -> (i32, i32) {
    %c0_i32 = arith.constant 0 : i32
    %c0_i32_0 = arith.constant 0 : i32
    %c0_i32_1 = arith.constant 0 : i32
    return %c0_i32, %c0_i32_0 : i32, i32
  }
  func.func @transform_7(%arg0: i32) -> (i32, i32) {
    %c0_i32 = arith.constant 0 : i32
    %c0_i32_0 = arith.constant 0 : i32
    %c0_i32_1 = arith.constant 0 : i32
    return %c0_i32, %c0_i32_0 : i32, i32
  }
  func.func @transform_8(%arg0: i32) -> (i32, i32) {
    %c0_i32 = arith.constant 0 : i32
    %c0_i32_0 = arith.constant 0 : i32
    %c0_i32_1 = arith.constant 0 : i32
    return %c0_i32, %c0_i32_0 : i32, i32
  }
  func.func @transform_9(%arg0: i32) -> (i32, i32) {
    %c0_i32 = arith.constant 0 : i32
    %c0_i32_0 = arith.constant 0 : i32
    return %arg0, %c0_i32 : i32, i32
  }
}

</mosaic_0001>

<bundles_post_ra>
// kernel: tpu_custom_call.1
= control target key start
LH: loop header
LB: loop body
LE: loop exit
PB: predicated region body
PF: predicated region fallthrough
CT: control target
= control target key end

     0   :  { %14 = vsyncpa [#allocation3], 0  ;;  %s513_s0 = inlined_call_operand.vmem [shape: f32[2,12], index: 0, kind: input, shape index: {}]   ;;  %s514_s1 = inlined_call_operand.vmem [shape: f32[2,4], index: 1, kind: input, shape index: {}]   ;;  %s515_s2 = inlined_call_operand.vmem [shape: f32[12,256], index: 2, kind: input, shape index: {}]   ;;  %s516_s3 = inlined_call_operand.vmem [shape: f32[4,256], index: 3, kind: input, shape index: {}]   ;;  %s517_s4 = inlined_call_operand.vmem [shape: f32[1,256], index: 4, kind: input, shape index: {}]   ;;  %s518_s5 = inlined_call_operand.hbm [shape: f32[256,128], index: 5, kind: input, shape index: {}]   ;;  %s519_s6 = inlined_call_operand.vmem [shape: f32[1,128], index: 6, kind: input, shape index: {}]   ;;  %s520_s7 = inlined_call_operand.vmem [shape: f32[128,2], index: 7, kind: input, shape index: {}]   ;;  %s521_s8 = inlined_call_operand.vmem [shape: f32[1,2], index: 8, kind: input, shape index: {}]   ;;  %s522_s9 = inlined_call_operand.hbm [shape: f32[2,2], index: 9, kind: output, shape index: {}]  }
   0x1   :  { %15 = vsyncpa [#allocation4], 0  ;;  %s30_s11 = sshll.u32 %s518_s5, 4  ;;  %s371_s12 = smov [#allocation2]   ;;  %s31_s11 = int_to_ptr.hbm [resolvable:$true] %s30_s11 }
   0x2   :  { %s32_s13 = sshll.u32 %s371_s12, 4  ;;  %s372_s14 = smov 128   ;;  %s33_s13 = int_to_ptr.vmem [resolvable:$true] %s32_s13 }
   0x3   :  { %s373_s15 = smov 8  }
   0x4   :  { %38 = dma.hbm_to_vmem [thread:$0]  %s31_s11, 4096, %s33_s13, [#allocation3], %s372_s14, %s372_s14, %s373_s15  }
   0x5   :  { %367 = dma.done.wait [#allocation3], 4096  }
   0x6   :  { %368 = vsyncadd [#allocation3], 4294963200  ;;  %v55_v0 = vld [vmem:[%s516_s3] sm:$0xff]  ;;  %v183_v2 = vld [vmem:[#allocation2 + $0x70] sm:$0xff]  ;;  %vm64_vm0 = vcmask 1043456   ;;  %vm60_vm1 = vcmask 31744  }
   0x7   :  { %57 = vst [vmem:[#allocation1] ss:$2 sm:$0xff] %v55_v0  ;;  %v184_v1 = vld [vmem:[#allocation2 + $0x78] sm:$0xff]  ;;  %v182_v3 = vld [vmem:[#allocation2 + $0x68] sm:$0xff]  ;;  %v181_v4 = vld [vmem:[#allocation2 + $0x60] sm:$0xff]  ;;  %vm109_vm2 = vcmask 97280  }
   0x8   :  { %205 = vmatpush.msra.mxu0 %v184_v1  ;;  %v54_v5 = vld [vmem:[%s514_s1] sm:$0x3]  ;;  %v52_v8 = vld [vmem:[%s515_s2 + $0x10] sm:$0xf]  ;;  %v53_v10 = vld [vmem:[%s515_s2 + $0x18] sm:$0xf] }
   0x9   :  { %v50_v9 = vld [vmem:[%s515_s2] sm:$0xff]  ;;  %v51_v11 = vld [vmem:[%s515_s2 + $0x8] sm:$0xff]  ;;  %v179_v15 = vld [vmem:[#allocation2 + $0x50] sm:$0xff]  ;;  %s374_s15 = smov [#allocation5]   ;;  %vm286_vm3 = vcmask 9216  }
   0xa   :  { %206 = vmatpush.msra.mxu0 %v183_v2  ;;  %v49_v12 = vld [vmem:[%s513_s0] sm:$0x3]  ;;  %v199_v16 = vld [vmem:[#allocation2 + $0xf0] sm:$0xff]  ;;  %v178_v17 = vld [vmem:[#allocation2 + $0x48] sm:$0xff]  ;;  %s293_s16 = sshll.u32 %s374_s15, 4  ;;  %s294_s16 = int_to_ptr.vmem [resolvable:$true] %s293_s16 }
   0xb   :  { %v180_v13 = vld [vmem:[#allocation2 + $0x58] sm:$0xff]  ;;  %v198_v18 = vld [vmem:[#allocation2 + $0xe8] sm:$0xff]  ;;  %v177_v19 = vld [vmem:[#allocation2 + $0x40] sm:$0xff] }
   0xc   :  { %207 = vmatpush.msra.mxu0 %v182_v3  ;;  %v200_v14 = vld [vmem:[#allocation2 + $0xf8] sm:$0xff]  ;;  %v197_v20 = vld [vmem:[#allocation2 + $0xe0] sm:$0xff]  ;;  %v175_v23 = vld [vmem:[#allocation2 + $0x30] sm:$0xff] }
   0xd   :  { %225 = vmatpush.msra.mxu1 %v200_v14  ;;  %v176_v21 = vld [vmem:[#allocation2 + $0x38] sm:$0xff]  ;;  %v195_v24 = vld [vmem:[#allocation2 + $0xd0] sm:$0xff]  ;;  %v174_v25 = vld [vmem:[#allocation2 + $0x28] sm:$0xff] }
   0xe   :  { %v58_v6 = vld.sshfl [vmem:[#allocation1] sm:$0xff pattern:$0x75316420]  ;;  %v59_v7 = vld.sshfl [vmem:[#allocation1 + $0x8] sm:$0xff pattern:$0x75316420]  ;;  %208 = vmatpush.msra.mxu0 %v181_v4 }
   0xf   :  { %305 = vmatpush.msk.msra.mxu3 %vm64_vm0, %v58_v6  ;;  %226 = vmatpush.msra.mxu1 %v199_v16  ;;  %v196_v22 = vld [vmem:[#allocation2 + $0xd8] sm:$0xff]  ;;  %v194_v26 = vld [vmem:[#allocation2 + $0xc8] sm:$0xff]  ;;  %v173_v27 = vld [vmem:[#allocation2 + $0x20] sm:$0xff] }
  0x10   :  { %306 = vmatmul.msk.f32.vlgmr.msra.gmra.mxu3 %vm60_vm1, %v54_v5  ;;  %209 = vmatpush.msra.mxu0 %v180_v13  ;;  %v193_v28 = vld [vmem:[#allocation2 + $0xc0] sm:$0xff]  ;;  %v172_v29 = vld [vmem:[#allocation2 + $0x18] sm:$0xff]  ;;  %v171_v31 = vld [vmem:[#allocation2 + $0x10] sm:$0xff] }
  0x11   :  { %307 = vmatpush.msk.msrb.mxu3 %vm64_vm0, %v59_v7  ;;  %227 = vmatpush.msra.mxu1 %v198_v18  ;;  %v192_v30 = vld [vmem:[#allocation2 + $0xb8] sm:$0xff]  ;;  %v191_v32 = vld [vmem:[#allocation2 + $0xb0] sm:$0xff]  ;;  %v170_v33 = vld [vmem:[#allocation2 + $0x8] sm:$0xff] }
  0x12   :  { %210 = vmatpush.msra.mxu0 %v179_v15  ;;  %v190_v34 = vld [vmem:[#allocation2 + $0xa8] sm:$0xff]  ;;  %v169_v35 = vld [vmem:[#allocation2] sm:$0xff]  ;;  %v188_v37 = vld [vmem:[#allocation2 + $0x98] sm:$0xff] }
  0x13   :  { %309 = vmatpush.msk.msra.mxu3 %vm64_vm0, %v52_v8  ;;  %228 = vmatpush.msra.mxu1 %v197_v20  ;;  %v189_v36 = vld [vmem:[#allocation2 + $0xa0] sm:$0xff]  ;;  %v187_v38 = vld [vmem:[#allocation2 + $0x90] sm:$0xff]  ;;  %v186_v39 = vld [vmem:[#allocation2 + $0x88] sm:$0xff] }
  0x14   :  { %211 = vmatpush.msra.mxu0 %v178_v17  ;;  %v185_v40 = vld [vmem:[#allocation2 + $0x80] sm:$0xff]  ;;  %v261_v41 = vld [vmem:[%s520_s7 + $0x78] sm:$0xff]  ;;  %v260_v42 = vld [vmem:[%s520_s7 + $0x70] sm:$0xff] }
  0x15   :  { %134 = vmatpush.msra.mxu3 %v50_v9  ;;  %229 = vmatpush.msra.mxu1 %v196_v22  ;;  %v259_v44 = vld [vmem:[%s520_s7 + $0x68] sm:$0xff]  ;;  %v258_v45 = vld [vmem:[%s520_s7 + $0x60] sm:$0xff]  ;;  %v257_v46 = vld [vmem:[%s520_s7 + $0x58] sm:$0xff] }
  0x16   :  { %212 = vmatpush.msra.mxu0 %v177_v19  ;;  %266 = vmatpush.msra.mxu2 %v261_v41  ;;  %v256_v47 = vld [vmem:[%s520_s7 + $0x50] sm:$0xff]  ;;  %v255_v49 = vld [vmem:[%s520_s7 + $0x48] sm:$0xff]  ;;  %v254_v50 = vld [vmem:[%s520_s7 + $0x40] sm:$0xff] }
  0x17   :  { %230 = vmatpush.msra.mxu1 %v195_v24  ;;  %v159_v51 = vld [vmem:[%s517_s4] sm:$0x3]  ;;  %v253_v52 = vld [vmem:[%s520_s7 + $0x38] sm:$0xff]  ;;  %v252_v63 = vld [vmem:[%s520_s7 + $0x30] sm:$0xff] }
  0x18   :  { %308 = vmatmul.msk.f32.vlgmr.msrb.gmra.mxu3 %vm60_vm1, %v54_v5  ;;  %213 = vmatpush.msra.mxu0 %v176_v21  ;;  %v161_v53 = vperm.slane %v159_v51, 0  ;;  %v162_v58 = vperm.slane %v159_v51, 1  ;;  %v251_v0 = vld [vmem:[%s520_s7 + $0x28] sm:$0xff]  ;;  %v250_v1 = vld [vmem:[%s520_s7 + $0x20] sm:$0xff]  ;;  %v249_v2 = vld [vmem:[%s520_s7 + $0x18] sm:$0xff] }
  0x19   :  { %311 = vmatpush.msk.msrb.mxu3 %vm64_vm0, %v53_v10  ;;  %231 = vmatpush.msra.mxu1 %v194_v26  ;;  %v248_v3 = vld [vmem:[%s520_s7 + $0x10] sm:$0xff]  ;;  %v247_v4 = vld [vmem:[%s520_s7 + $0x8] sm:$0xff]  ;;  %v246_v5 = vld [vmem:[%s520_s7] sm:$0xff]  ;;  %s295_s7 = sshll.u32 %s522_s9, 4  ;;  %s296_s7 = int_to_ptr.hbm [resolvable:$true] %s295_s7 }
  0x1a   :  { %214 = vmatpush.msra.mxu0 %v175_v23  ;;  %267 = vmatpush.msra.mxu2 %v260_v42  ;;  %v317_v6 = vld [vmem:[%s519_s6] ss:$0 sm:$0xff] }
  0x1b   :  { %154 = vmatpush.msrb.mxu3 %v51_v11  ;;  %232 = vmatpush.msra.mxu1 %v193_v28 }
  0x1c   :  { %215 = vmatpush.msra.mxu0 %v174_v25  ;;  %268 = vmatpush.msra.mxu2 %v259_v44 }
  0x1d   :  { %233 = vmatpush.msra.mxu1 %v192_v30 }
  0x1e   :  { %216 = vmatpush.msra.mxu0 %v173_v27  ;;  %269 = vmatpush.msra.mxu2 %v258_v45 }
  0x1f   :  { %234 = vmatpush.msra.mxu1 %v191_v32 }
  0x20   :  { %310 = vmatmul.msk.f32.vlgmr.msra.gmra.mxu3 %vm109_vm2, %v49_v12  ;;  %217 = vmatpush.msra.mxu0 %v172_v29 }
  0x21   :  { %235 = vmatpush.msra.mxu1 %v190_v34  ;;  %270 = vmatpush.msra.mxu2 %v257_v46 }
  0x22   :  { %218 = vmatpush.msra.mxu0 %v171_v31 }
  0x23   :  { %236 = vmatpush.msra.mxu1 %v189_v36  ;;  %271 = vmatpush.msra.mxu2 %v256_v47 }
  0x24   :  { %219 = vmatpush.msra.mxu0 %v170_v33 }
  0x25   :  { %237 = vmatpush.msra.mxu1 %v188_v37  ;;  %272 = vmatpush.msra.mxu2 %v255_v49 }
  0x26   :  { %220 = vmatpush.msra.mxu0 %v169_v35 }
  0x27   :  { %238 = vmatpush.msra.mxu1 %v187_v38  ;;  %273 = vmatpush.msra.mxu2 %v254_v50 }
  0x28   :  { %312 = vmatmul.msk.f32.vlgmr.msrb.gmra.mxu3 %vm109_vm2, %v49_v12  ;;  %v318_v12 = vld [vmem:[%s521_s8] ss:$0 sm:$0xff] }
  0x29   :  { %239 = vmatpush.msra.mxu1 %v186_v39  ;;  %274 = vmatpush.msra.mxu2 %v253_v52 }
  0x2b   :  { %240 = vmatpush.msra.mxu1 %v185_v40  ;;  %275 = vmatpush.msra.mxu2 %v252_v63 }
  0x2d   :  { %276 = vmatpush.msra.mxu2 %v251_v0 }
  0x2f   :  { %277 = vmatpush.msra.mxu2 %v250_v1 }
  0x31   :  { %278 = vmatpush.msra.mxu2 %v249_v2 }
  0x33   :  { %279 = vmatpush.msra.mxu2 %v248_v3 }
  0x35   :  { %280 = vmatpush.msra.mxu2 %v247_v4 }
  0x37   :  { %281 = vmatpush.msra.mxu2 %v246_v5 }
  0x93   :  { %v86_v43 = vpop.f32.mrf.mxu3 }
  0x9b   :  { %v106_v48 = vpop.f32.mrf.mxu3 }
  0xa3   :  { %v136_v54 = vpop.f32.mrf.mxu3 }
  0xa4   :  { %v137_v55 = vadd.f32 %v136_v54, %v86_v43 }
  0xa6   :  { %v165_v56 = vadd.f32 %v161_v53, %v137_v55 }
  0xa8   :  { %v167_v57 = vmax.f32 %v165_v56, 0.0 }
  0xaa   :  { %221 = vmatmul.f32.vlgmr.msra.gmra.mxu0 %v167_v57 }
  0xab   :  { %v156_v59 = vpop.f32.mrf.mxu3 }
  0xac   :  { %v157_v60 = vadd.f32 %v156_v59, %v106_v48 }
  0xae   :  { %v166_v61 = vadd.f32 %v162_v58, %v157_v60 }
  0xb0   :  { %v168_v62 = vmax.f32 %v166_v61, 0.0 }
  0xb2   :  { %241 = vmatmul.f32.vlgmr.msra.gmra.mxu1 %v168_v62 }
 0x127   :  { %v222_v7 = vpop.f32.mrf.mxu0 }
 0x128   :  { %v223_v8 = vadd.f32 %v317_v6, %v222_v7 }
 0x12f   :  { %v242_v9 = vpop.f32.mrf.mxu1 }
 0x130   :  { %v243_v10 = vadd.f32 %v242_v9, %v223_v8 }
 0x132   :  { %v245_v11 = vmax.f32 %v243_v10, 0.0 }
 0x134   :  { %282 = vmatmul.f32.vlgmr.msra.gmra.mxu2 %v245_v11 }
 0x1b7   :  { %v283_v13 = vpop.f32.mrf.mxu2 }
 0x1b8   :  { %v284_v14 = vadd.f32 %v318_v12, %v283_v13 }
 0x1ba   :  { %287 = vst.msk [vmem:[#allocation5] sm:$0x3] %vm286_vm3, %v284_v14 }
 0x1bb   :  { %298 = dma.vmem_to_hbm [thread:$0]  %s294_s16, 32, %s296_s7, [#allocation4]  }
 0x1bc   :  { %369 = dma.done.wait [#allocation4], 32  }
 0x1bd   :  { %370 = vsyncadd [#allocation4], 4294967264 }
 0x1be   :  { %303 = vsyncpa [#allocation3], 1 }
 0x1bf   :  { %304 = vsyncpa [#allocation4], 1 }

</bundles_post_ra>
